<compile_context>
chip_gen: v6e
topology: v6e:2x2x1
jax: 0.10.0
libtpu: 0.0.40
codegen_flags: <defaults>
</compile_context>

<pallas_src>
import functools

import jax
import jax.numpy as jnp
from jax import lax
from jax.experimental import pallas as pl
from jax.experimental.pallas import tpu as pltpu

_LOG_CLAMP = -100.0  # PyTorch BCE clamps log terms at -100
_LANES = 128


def _device_config():
    """Return (max_tile_rows, num_cores, vmem_limit_bytes) per TPU generation."""
    kind = ""
    try:
        kind = jax.devices()[0].device_kind.lower()
    except Exception:
        pass
    if "v7" in kind:
        # 2 TensorCores/chip; 4 MiB/input/tile * 2 inputs * 2 buffers = 16 MiB,
        # raise the 32 MiB scoped default for headroom.
        return 8192, 2, 40 << 20
    if "v6" in kind:
        return 8192, 1, 40 << 20
    # v5e and anything unrecognized: 16 MiB scoped-VMEM default ->
    # 4096 rows keeps 2 inputs x 2 buffers at 8 MiB.
    return 4096, 1, None


def _bce_kernel(p_ref, t_ref, out_ref, *, tr, rows, steps_per_core,
                last_block, masked, hard_targets):
    i = pl.program_id(1)  # reduction axis

    @pl.when(i == 0)
    def _():
        out_ref[...] = jnp.zeros_like(out_ref)

    p = p_ref[...].astype(jnp.float32)
    t = t_ref[...].astype(jnp.float32)

    if hard_targets:
        # Targets known to be exactly {0,1}: one log per element (halves EUP).
        per_elem = -jnp.maximum(jnp.log(jnp.where(t > 0.5, p, 1.0 - p)),
                                _LOG_CLAMP)
    else:
        log_p = jnp.maximum(jnp.log(p), _LOG_CLAMP)
        log_1mp = jnp.maximum(jnp.log(1.0 - p), _LOG_CLAMP)
        # == -(t*log_p + (1-t)*log_1mp), with one fewer mul and sub.
        per_elem = -(log_1mp + t * (log_p - log_1mp))

    if masked:
        # Row-only mask: zero (a) rows of the partial final block beyond `rows`
        # and (b) entire re-read blocks (natural block index past last_block,
        # clamped by the index_map). Uses a select, so NaN/Inf from log() of
        # the garbage/OOB region never reaches the accumulator. int32 is safe:
        # row indices, not flat element indices.
        c = pl.program_id(0)
        bi = c * steps_per_core + i          # natural (unclamped) block index
        valid_rows = rows - bi * tr          # <= 0 for fully re-read blocks
        row_ids = lax.broadcasted_iota(jnp.int32, (tr, _LANES), 0)
        per_elem = jnp.where(row_ids < valid_rows, per_elem, 0.0)

    # 4 independent partial sums break the serial vadd chain (tr/8 deep) into
    # 4 interleavable chains of tr/32, then 3 adds and one fold into the
    # resident (1,8,128) accumulator. Pure VPU; no per-step cross-lane reduce.
    pe = per_elem.reshape(4, tr // 32, 8, _LANES)
    tile_sum = pe.sum(axis=1).sum(axis=0)            # (8, 128)
    out_ref[...] += tile_sum.reshape(1, 8, _LANES)


def bce_loss_pallas(pred, tar, *, hard_targets=False, max_tile_rows=None,
                    num_cores=None, vmem_limit_bytes=None):
    """Mean binary cross entropy via a Pallas TPU reduction kernel.

    pred, tar: arrays of identical shape (any rank, any float dtype),
    pred values in [0, 1] as for torch.nn.functional.binary_cross_entropy.
    """
    assert pred.shape == tar.shape
    n = pred.size
    assert n > 0

    if max_tile_rows is None or num_cores is None or vmem_limit_bytes is None:
        d_rows, d_cores, d_vmem = _device_config()
        max_tile_rows = max_tile_rows if max_tile_rows is not None else d_rows
        num_cores = num_cores if num_cores is not None else d_cores
        vmem_limit_bytes = (vmem_limit_bytes if vmem_limit_bytes is not None
                            else d_vmem)

    p_flat = pred.reshape(-1)
    t_flat = tar.reshape(-1)

    lane_pad = (-n) % _LANES
    if lane_pad:
        # Rare path (numel not a multiple of 128). Pad <=127 elements with
        # (p=1, t=1) whose BCE contribution is exactly 0, so no lane mask is
        # needed and the mean divisor stays n.
        p_flat = jnp.concatenate(
            [p_flat, jnp.ones((lane_pad,), dtype=p_flat.dtype)])
        t_flat = jnp.concatenate(
            [t_flat, jnp.ones((lane_pad,), dtype=t_flat.dtype)])

    rows = (n + lane_pad) // _LANES
    p2 = p_flat.reshape(rows, _LANES)      # free reshape when lane_pad == 0
    t2 = t_flat.reshape(rows, _LANES)

    # Tile rows: multiple of 32 (for the 4-way partial-sum split and f32/bf16
    # (8/16,128) tiling), capped per chip.
    tr = min(max_tile_rows, ((rows + 31) // 32) * 32)
    num_blocks = -(-rows // tr)                      # cdiv
    steps_per_core = -(-num_blocks // num_cores)     # cdiv
    last_block = num_blocks - 1
    # Mask only needed when the grid covers more rows than exist (partial final
    # block and/or re-read blocks on the core-split axis).
    masked = (num_cores * steps_per_core * tr) != rows

    def in_map(c, i):
        # Clamp to the last in-bounds block; overrun grid points re-read it and
        # the in-kernel row mask zeroes their contribution.
        return (jnp.minimum(c * steps_per_core + i, last_block), 0)

    kernel = functools.partial(
        _bce_kernel, tr=tr, rows=rows, steps_per_core=steps_per_core,
        last_block=last_block, masked=masked, hard_targets=hard_targets)

    sem0 = pltpu.PARALLEL if num_cores > 1 else pltpu.ARBITRARY
    cp_kwargs = dict(dimension_semantics=(sem0, pltpu.ARBITRARY))
    if vmem_limit_bytes is not None:
        cp_kwargs["vmem_limit_bytes"] = vmem_limit_bytes

    partials = pl.pallas_call(
        kernel,
        out_shape=jax.ShapeDtypeStruct((num_cores, 8, _LANES), jnp.float32),
        grid_spec=pltpu.PrefetchScalarGridSpec(
            num_scalar_prefetch=0,
            grid=(num_cores, steps_per_core),
            in_specs=[
                pl.BlockSpec((tr, _LANES), in_map),
                pl.BlockSpec((tr, _LANES), in_map),
            ],
            # Per-core accumulator lives in the output block (resident across i).
            out_specs=pl.BlockSpec((1, 8, _LANES), lambda c, i: (c, 0, 0)),
        ),
        compiler_params=pltpu.CompilerParams(**cp_kwargs),
    )(p2, t2)

    # Single tiny final cross-lane reduction + mean normalization in the wrapper.
    return (jnp.sum(partials) / jnp.float32(n)).reshape(())


def bce_loss_ref(pred, tar):
    """Pure-JAX reference matching F.binary_cross_entropy (mean reduction)."""
    p = pred.astype(jnp.float32)
    t = tar.astype(jnp.float32)
    log_p = jnp.maximum(jnp.log(p), _LOG_CLAMP)
    log_1mp = jnp.maximum(jnp.log(1.0 - p), _LOG_CLAMP)
    return jnp.mean(-(t * log_p + (1.0 - t) * log_1mp))


if __name__ == "__main__":
    key = jax.random.PRNGKey(0)
    k1, k2, k3, k4 = jax.random.split(key, 4)

    # Case 1: lane-aligned NCHW input (pred in (0,1) as if post-sigmoid).
    shape1 = (2, 4, 16, 16)
    pred1 = jax.nn.sigmoid(jax.random.normal(k1, shape1, dtype=jnp.float32))
    tar1 = (jax.random.uniform(k2, shape1) > 0.5).astype(jnp.float32)

    loss1 = jax.block_until_ready(bce_loss_pallas(pred1, tar1))
    ref1 = jax.block_until_ready(bce_loss_ref(pred1, tar1))
    assert jnp.allclose(loss1, ref1, rtol=1e-5, atol=1e-5), (loss1, ref1)

    # Case 2: odd (non-multiple-of-128) element count exercises the small
    # lane-pad + partial-block mask path.
    shape2 = (3, 5, 7, 11)
    pred2 = jax.nn.sigmoid(jax.random.normal(k3, shape2, dtype=jnp.float32))
    tar2 = (jax.random.uniform(k4, shape2) > 0.5).astype(jnp.float32)

    loss2 = jax.block_until_ready(bce_loss_pallas(pred2, tar2))
    ref2 = jax.block_until_ready(bce_loss_ref(pred2, tar2))
    assert jnp.allclose(loss2, ref2, rtol=1e-5, atol=1e-5), (loss2, ref2)

    # Case 3: hard-target fast path (single log per element).
    loss3 = jax.block_until_ready(bce_loss_pallas(pred1, tar1, hard_targets=True))
    assert jnp.allclose(loss3, ref1, rtol=1e-5, atol=1e-5), (loss3, ref1)

    print("KERNEL_OK")
</pallas_src>

<mosaic_0001>
module attributes {stable_mosaic.version = 11 : i64} {
  func.func @_bce_kernel(%arg0: i32, %arg1: i32, %arg2: memref<32x128xf32, #tpu.memory_space<vmem>>, %arg3: memref<32x128xf32, #tpu.memory_space<vmem>>, %arg4: memref<1x8x128xf32, #tpu.memory_space<vmem>>) attributes {dimension_semantics = [#tpu.dimension_semantics<arbitrary>, #tpu.dimension_semantics<arbitrary>], iteration_bounds = array<i64: 1, 1>, scalar_prefetch = 0 : i64, scratch_operands = 0 : i64, tpu.core_type = #tpu.core_type<tc>, window_params = [{transform_indices = @transform_0, window_bounds = array<i64: 32, 128>}, {transform_indices = @transform_1, window_bounds = array<i64: 32, 128>}, {transform_indices = @transform_2, window_bounds = array<i64: 1, 8, 128>}]} {
    %c0_i32 = arith.constant 0 : i32
    %0 = arith.cmpi eq, %arg1, %c0_i32 : i32
    %1 = arith.extui %0 : i1 to i32
    %c0_i32_0 = arith.constant 0 : i32
    %2 = arith.cmpi ne, %1, %c0_i32_0 : i32
    scf.if %2 {
      %cst_16 = arith.constant 0.000000e+00 : f32
      %34 = vector.broadcast %cst_16 : f32 to vector<1x8x128xf32>
      %c0_17 = arith.constant 0 : index
      %c0_18 = arith.constant 0 : index
      %c0_19 = arith.constant 0 : index
      %35 = vector.load %arg4[%c0_17, %c0_18, %c0_19] : memref<1x8x128xf32, #tpu.memory_space<vmem>>, vector<1x8x128xf32>
      tpu.vector_store %arg4[%c0_17, %c0_18, %c0_19], %34 {strides = array<i32>} : memref<1x8x128xf32, #tpu.memory_space<vmem>>, vector<1x8x128xf32>,
    } else {
    }
    %c0 = arith.constant 0 : index
    %c0_1 = arith.constant 0 : index
    %3 = vector.load %arg2[%c0, %c0_1] : memref<32x128xf32, #tpu.memory_space<vmem>>, vector<32x128xf32>
    %c0_2 = arith.constant 0 : index
    %c0_3 = arith.constant 0 : index
    %4 = vector.load %arg3[%c0_2, %c0_3] : memref<32x128xf32, #tpu.memory_space<vmem>>, vector<32x128xf32>
    %5 = math.log %3 : vector<32x128xf32>
    %cst = arith.constant -1.000000e+02 : f32
    %6 = vector.broadcast %cst : f32 to vector<32x128xf32>
    %7 = arith.maximumf %5, %6 : vector<32x128xf32>
    %cst_4 = arith.constant 1.000000e+00 : f32
    %8 = vector.broadcast %cst_4 : f32 to vector<32x128xf32>
    %9 = arith.subf %8, %3 : vector<32x128xf32>
    %10 = math.log %9 : vector<32x128xf32>
    %cst_5 = arith.constant -1.000000e+02 : f32
    %11 = vector.broadcast %cst_5 : f32 to vector<32x128xf32>
    %12 = arith.maximumf %10, %11 : vector<32x128xf32>
    %13 = arith.subf %7, %12 : vector<32x128xf32>
    %14 = arith.mulf %4, %13 : vector<32x128xf32>
    %15 = arith.addf %12, %14 : vector<32x128xf32>
    %cst_6 = arith.constant 0.000000e+00 : f32
    %16 = vector.broadcast %cst_6 : f32 to vector<32x128xf32>
    %17 = arith.subf %16, %15 : vector<32x128xf32>
    %c1_i32 = arith.constant 1 : i32
    %18 = arith.muli %arg0, %c1_i32 : i32
    %19 = arith.addi %18, %arg1 : i32
    %c32_i32 = arith.constant 32 : i32
    %20 = arith.muli %19, %c32_i32 : i32
    %c16_i32 = arith.constant 16 : i32
    %21 = arith.subi %c16_i32, %20 : i32
    %22 = tpu.iota {dimensions = array<i32: 0>} : vector<32x128xi32>
    %23 = vector.broadcast %21 : i32 to vector<32x128xi32>
    %24 = arith.cmpi slt, %22, %23 : vector<32x128xi32>
    %cst_7 = arith.constant 0.000000e+00 : f32
    %25 = vector.broadcast %cst_7 : f32 to vector<32x128xf32>
    %26 = arith.select %24, %17, %25 : vector<32x128xi1>, vector<32x128xf32>
    %27 = vector.shape_cast %26 : vector<32x128xf32> to vector<4x1x8x128xf32>
    %cst_8 = arith.constant dense<0.000000e+00> : vector<4x8x128xf32>
    %28 = vector.multi_reduction <add>, %27, %cst_8 [1] : vector<4x1x8x128xf32> to vector<4x8x128xf32>
    %cst_9 = arith.constant dense<0.000000e+00> : vector<8x128xf32>
    %29 = vector.multi_reduction <add>, %28, %cst_9 [0] : vector<4x8x128xf32> to vector<8x128xf32>
    %c0_10 = arith.constant 0 : index
    %c0_11 = arith.constant 0 : index
    %c0_12 = arith.constant 0 : index
    %30 = vector.load %arg4[%c0_10, %c0_11, %c0_12] : memref<1x8x128xf32, #tpu.memory_space<vmem>>, vector<1x8x128xf32>
    %31 = vector.shape_cast %29 : vector<8x128xf32> to vector<1x8x128xf32>
    %32 = arith.addf %30, %31 : vector<1x8x128xf32>
    %c0_13 = arith.constant 0 : index
    %c0_14 = arith.constant 0 : index
    %c0_15 = arith.constant 0 : index
    %33 = vector.load %arg4[%c0_13, %c0_14, %c0_15] : memref<1x8x128xf32, #tpu.memory_space<vmem>>, vector<1x8x128xf32>
    tpu.vector_store %arg4[%c0_13, %c0_14, %c0_15], %32 {strides = array<i32>} : memref<1x8x128xf32, #tpu.memory_space<vmem>>, vector<1x8x128xf32>,
    return
  }
  func.func @transform_0(%arg0: i32, %arg1: i32) -> (i32, i32) {
    %c1_i32 = arith.constant 1 : i32
    %0 = arith.muli %arg0, %c1_i32 : i32
    %1 = arith.addi %0, %arg1 : i32
    %c0_i32 = arith.constant 0 : i32
    %2 = arith.minsi %1, %c0_i32 : i32
    %c0_i32_0 = arith.constant 0 : i32
    %c0_i32_1 = arith.constant 0 : i32
    return %2, %c0_i32_0 : i32, i32
  }
  func.func @transform_1(%arg0: i32, %arg1: i32) -> (i32, i32) {
    %c1_i32 = arith.constant 1 : i32
    %0 = arith.muli %arg0, %c1_i32 : i32
    %1 = arith.addi %0, %arg1 : i32
    %c0_i32 = arith.constant 0 : i32
    %2 = arith.minsi %1, %c0_i32 : i32
    %c0_i32_0 = arith.constant 0 : i32
    %c0_i32_1 = arith.constant 0 : i32
    return %2, %c0_i32_0 : i32, i32
  }
  func.func @transform_2(%arg0: i32, %arg1: i32) -> (i32, i32, i32) {
    %c0_i32 = arith.constant 0 : i32
    %c0_i32_0 = arith.constant 0 : i32
    %c0_i32_1 = arith.constant 0 : i32
    return %arg0, %c0_i32, %c0_i32_0 : i32, i32, i32
  }
}

</mosaic_0001>

<bundles_post_ra>
// kernel: tpu_custom_call.1
= control target key start
LH: loop header
LB: loop body
LE: loop exit
PB: predicated region body
PF: predicated region fallthrough
CT: control target
= control target key end

     0   :  { %7 = vsyncpa [#allocation3], 0  ;;  %s285_s0 = inlined_call_operand.hbm [shape: f32[16,128], index: 0, kind: input, shape index: {}]   ;;  %s286_s1 = inlined_call_operand.hbm [shape: f32[16,128], index: 1, kind: input, shape index: {}]   ;;  %s287_s2 = inlined_call_operand.hbm [shape: f32[1,8,128], index: 2, kind: output, shape index: {}]  }
   0x1   :  { %8 = vsyncpa [#allocation6], 0 }
   0x2   :  { %9 = vsyncpa [#allocation4], 0 }
   0x3   :  { %20 = vsyncadd [#allocation3], 256  ;;  %s256_s9 = smov [#allocation2]  }
   0x4   :  { %s25_s10 = sshll.u32 %s256_s9, 4  ;;  %s26_s10 = int_to_ptr.vmem [resolvable:$true] %s25_s10 }
   0x5   :  { %s198_s11 = scalar_lea.vmem %s26_s10, 256  ;;  %s202_s12 = scalar_lea.vmem %s26_s10, 512 }
   0x6   :  { %p199_p0 = scmp.ne.s32.totalorder %s26_s10, %s198_s11  ;;  %p203_p1 = scmp.lt.s32.totalorder %s26_s10, %s26_s10 }
   0x7   :  { %p204_p2 = scmp.lt.s32.totalorder %s202_s12, %s198_s11 }
   0x9   :  { %p205_p3 = por %p204_p2, %p203_p1 }
   0xb   :  { %p206_p4 = pnand %p205_p3, %p199_p0 }
   0xd   :  { %209 = shalt.err (!%p206_p4)
}
   0xe   :  { %s257_s13 = smov 128   ;;  %s258_s14 = smov 8  }
   0xf   :  { %31 = dma.hbm_to_vmem [thread:$0]  %s285_s0, 256, %s26_s10, [#allocation3], %s257_s13, %s257_s13, %s258_s14  }
  0x10   :  { %42 = vsyncadd [#allocation6], 256  ;;  %s259_s17 = smov [#allocation5]  }
  0x11   :  { %s47_s18 = sshll.u32 %s259_s17, 4  ;;  %s48_s18 = int_to_ptr.vmem [resolvable:$true] %s47_s18 }
  0x12   :  { %s218_s19 = scalar_lea.vmem %s48_s18, 256  ;;  %s222_s20 = scalar_lea.vmem %s48_s18, 512 }
  0x13   :  { %p219_p5 = scmp.ne.s32.totalorder %s48_s18, %s218_s19  ;;  %p223_p6 = scmp.lt.s32.totalorder %s48_s18, %s48_s18 }
  0x14   :  { %p224_p7 = scmp.lt.s32.totalorder %s222_s20, %s218_s19 }
  0x16   :  { %p225_p8 = por %p224_p7, %p223_p6 }
  0x18   :  { %p226_p9 = pnand %p225_p8, %p219_p5 }
  0x1a   :  { %229 = shalt.err (!%p226_p9)
}
  0x1b   :  { %53 = dma.hbm_to_vmem [thread:$0]  %s286_s1, 256, %s48_s18, [#allocation6], %s257_s13, %s257_s13, %s258_s14  }
  0x1c   :  { %250 = dma.done.wait [#allocation3], 512  }
  0x1d   :  { %251 = vsyncadd [#allocation3], 4294966784 }
  0x1e   :  { %252 = dma.done.wait [#allocation6], 512  }
  0x1f   :  { %253 = vsyncadd [#allocation6], 4294966784  ;;  %v77_v0 = vld [vmem:[#allocation2] sm:$0xff]  ;;  %v78_v1 = vld [vmem:[#allocation2 + $0x8] sm:$0xff]  ;;  %s260_s0 = smov [#allocation7]  }
  0x20   :  { %182 = vlog2.f32 %v77_v0  ;;  %v97_v2 = vsub.f32 1.0, %v77_v0  ;;  %v98_v3 = vsub.f32 1.0, %v78_v1  ;;  %v81_v15 = vld [vmem:[#allocation5] sm:$0xff]  ;;  %v82_v17 = vld [vmem:[#allocation5 + $0x8] sm:$0xff]  ;;  %s162_s1 = sshll.u32 %s260_s0, 4  ;;  %s163_s1 = int_to_ptr.vmem [resolvable:$true] %s162_s1 }
  0x21   :  { %184 = vlog2.f32 %v78_v1  ;;  %s230_s23 = scalar_lea.vmem %s163_s1, 128  ;;  %p235_p11 = scmp.lt.s32.totalorder %s163_s1, %s163_s1 }
  0x22   :  { %186 = vlog2.f32 %v97_v2  ;;  %p231_p10 = scmp.ne.s32.totalorder %s163_s1, %s230_s23  ;;  %p236_p12 = scmp.lt.s32.totalorder %s230_s23, %s230_s23 }
  0x23   :  { %188 = vlog2.f32 %v98_v3 }
  0x24   :  { %p237_p13 = por %p236_p12, %p235_p11 }
  0x26   :  { %p238_p0 = pnand %p237_p13, %p231_p10 }
  0x2d   :  { %v183_v4 = vpop.eup %182 }
  0x2e   :  { %v185_v5 = vpop.eup %184  ;;  %v86_v6 = vmul.f32 0.6931472, %v183_v4 }
  0x2f   :  { %v187_v7 = vpop.eup %186  ;;  %v88_v8 = vmul.f32 0.6931472, %v185_v5 }
  0x30   :  { %v189_v9 = vpop.eup %188  ;;  %v93_v10 = vmax.f32 %v86_v6, -100.0  ;;  %v102_v11 = vmul.f32 0.6931472, %v187_v7 }
  0x31   :  { %v94_v12 = vmax.f32 %v88_v8, -100.0  ;;  %v104_v13 = vmul.f32 0.6931472, %v189_v9 }
  0x32   :  { %v109_v14 = vmax.f32 %v102_v11, -100.0 }
  0x33   :  { %v110_v16 = vmax.f32 %v104_v13, -100.0 }
  0x34   :  { %v113_v18 = vsub.f32 %v93_v10, %v109_v14 }
  0x35   :  { %v114_v19 = vsub.f32 %v94_v12, %v110_v16 }
  0x36   :  { %v117_v20 = vmul.f32 %v113_v18, %v81_v15 }
  0x37   :  { %v118_v21 = vmul.f32 %v114_v19, %v82_v17 }
  0x38   :  { %v121_v22 = vadd.f32 %v117_v20, %v109_v14 }
  0x39   :  { %v122_v23 = vadd.f32 %v118_v21, %v110_v16 }
  0x3a   :  { %v125_v24 = vsub.f32 0.0, %v121_v22 }
  0x3b   :  { %v126_v25 = vsub.f32 0.0, %v122_v23 }
  0x3d   :  { %v150_v26 = vadd.f32 %v126_v25, %v125_v24 }
  0x3f   :  { %155 = vst [vmem:[#allocation7] sm:$0xff] %v150_v26 }
  0x40   :  { %241 = shalt.err (!%p238_p0)
}
  0x41   :  { %165 = dma.vmem_to_hbm [thread:$0]  %s163_s1, 128, %s287_s2, [#allocation4]  }
  0x42   :  { %254 = dma.done.wait [#allocation4], 128  }
  0x43   :  { %255 = vsyncadd [#allocation4], 4294967168 }
  0x44   :  { %169 = vsyncpa [#allocation3], 1 }
  0x45   :  { %170 = vsyncpa [#allocation6], 1 }
  0x46   :  { %171 = vsyncpa [#allocation4], 1 }

</bundles_post_ra>
